<compile_context>
chip_gen: v5e
topology: v5e:2x2
jax: 0.10.0
libtpu: 0.0.40
codegen_flags: <defaults>
</compile_context>

<pallas_src>
import functools

import jax
import jax.numpy as jnp
from jax.experimental import pallas as pl
from jax.experimental.pallas import tpu as pltpu

BN_EPS = 1e-5


def _pad_to(n, m):
    return ((n + m - 1) // m) * m


def _bn_relu(h, gamma, beta, n_valid):
    """BatchNorm1d (training-mode batch stats, biased var) + ReLU, in f32.

    Rows >= n_valid are zero-padding rows and are excluded from the statistics.
    Variance is computed in centered form (no E[x^2]-E[x]^2 cancellation).
    """
    bp = h.shape[0]
    inv_n = 1.0 / n_valid
    if bp == n_valid:
        mean = jnp.sum(h, axis=0, keepdims=True) * inv_n
        centered = h - mean
        var = jnp.sum(centered * centered, axis=0, keepdims=True) * inv_n
    else:
        rows = jax.lax.broadcasted_iota(jnp.int32, (bp, 1), 0)
        mask = (rows < n_valid).astype(jnp.float32)
        mean = jnp.sum(h * mask, axis=0, keepdims=True) * inv_n
        centered = h - mean
        cm = centered * mask
        var = jnp.sum(cm * cm, axis=0, keepdims=True) * inv_n
    out = centered * jax.lax.rsqrt(var + BN_EPS) * gamma + beta
    return jnp.maximum(out, 0.0)


def projection_head_kernel(
    x_ref,
    w1_ref, b1_ref, g1_ref, be1_ref,
    w2_ref, b2_ref, g2_ref, be2_ref,
    w3_ref, b3_ref,
    o_ref,
    acc_ref,
    *, n_valid_rows,
):
    j = pl.program_id(0)

    # ---- Layer 1, one hidden-dim column tile: Linear -> BN(batch) -> ReLU ----
    h1 = jnp.dot(x_ref[...], w1_ref[...], preferred_element_type=jnp.float32)
    h1 = h1 + b1_ref[...]
    h1 = _bn_relu(h1, g1_ref[...], be1_ref[...], n_valid_rows)

    # ---- Layer 2 partial product: acc += h1_tile @ W2[tile, :] ----
    @pl.when(j == 0)
    def _():
        acc_ref[...] = jnp.zeros_like(acc_ref)

    acc_ref[...] += jnp.dot(
        h1.astype(w2_ref.dtype), w2_ref[...], preferred_element_type=jnp.float32
    )

    # ---- Epilogue on the last hidden-dim tile: BN2 -> ReLU -> Linear 3 ----
    @pl.when(j == pl.num_programs(0) - 1)
    def _():
        h2 = acc_ref[...] + b2_ref[...]
        h2 = _bn_relu(h2, g2_ref[...], be2_ref[...], n_valid_rows)
        out = jnp.dot(
            h2.astype(w3_ref.dtype), w3_ref[...], preferred_element_type=jnp.float32
        ) + b3_ref[...]
        o_ref[...] = out.astype(o_ref.dtype)


def projection_head(x, params):
    """x: [B, input_dim] float32. params: dict of weights (see init_params)."""
    B, D = x.shape
    Dout = params["w3"].shape[1]

    Bp = max(_pad_to(B, 8), 8)          # f32 sublane multiple
    Dp = _pad_to(D, 128)                # lane multiple (feature dim)
    Op = _pad_to(Dout, 128)             # lane multiple (output dim)

    # Hidden-dim tile: multiple of 128; prefer >=256 to fill the v6e/v7x MXU.
    if Dp % 512 == 0:
        TJ = 512
    elif Dp % 256 == 0:
        TJ = 256
    else:
        TJ = 128
    n_j = Dp // TJ

    f32, bf16 = jnp.float32, jnp.bfloat16

    def pad2(a, r, c, dtype):
        buf = jnp.zeros((r, c), dtype)
        return buf.at[: a.shape[0], : a.shape[1]].set(a.astype(dtype))

    # Zero-padding keeps padded feature/output columns exactly zero through the
    # whole network (weight cols/rows zero, bias/gamma/beta pads zero), so
    # slicing the padded output afterwards recovers the exact result.
    xp = pad2(x, Bp, Dp, bf16)
    w1p = pad2(params["w1"], Dp, Dp, bf16)
    w2p = pad2(params["w2"], Dp, Dp, bf16)
    w3p = pad2(params["w3"], Dp, Op, bf16)
    b1p = pad2(params["b1"], 1, Dp, f32)
    b2p = pad2(params["b2"], 1, Dp, f32)
    b3p = pad2(params["b3"], 1, Op, f32)
    g1p = pad2(params["g1"], 1, Dp, f32)
    g2p = pad2(params["g2"], 1, Dp, f32)
    be1p = pad2(params["be1"], 1, Dp, f32)
    be2p = pad2(params["be2"], 1, Dp, f32)

    # VMEM budget from actual buffer sizes (+2x headroom), floored for safety,
    # capped for v7x's 64 MiB per-TC VMEM.
    bfb, f4 = 2, 4
    est = (
        Bp * Dp * bfb                      # x (resident, bf16)
        + 2 * Dp * TJ * bfb                # w1 column tile (double-buffered)
        + 2 * TJ * Dp * bfb                # w2 row tile (double-buffered)
        + 2 * 3 * TJ * f4                  # b1/g1/be1 tiles (double-buffered)
        + 3 * Dp * f4                      # b2/g2/be2 (resident)
        + Dp * Op * bfb + Op * f4          # w3, b3 (resident)
        + Bp * Dp * f4                     # layer-2 f32 accumulator (scratch)
        + 2 * Bp * Op * f4                 # output
    )
    vmem_limit = int(min(max(2 * est + (1 << 20), 8 << 20), 64 << 20))

    kernel = functools.partial(projection_head_kernel, n_valid_rows=B)

    grid_spec = pltpu.PrefetchScalarGridSpec(
        num_scalar_prefetch=0,
        grid=(n_j,),
        in_specs=[
            pl.BlockSpec((Bp, Dp), lambda j: (0, 0)),   # x (resident)
            pl.BlockSpec((Dp, TJ), lambda j: (0, j)),   # w1 column tile
            pl.BlockSpec((1, TJ), lambda j: (0, j)),    # b1 tile
            pl.BlockSpec((1, TJ), lambda j: (0, j)),    # gamma1 tile
            pl.BlockSpec((1, TJ), lambda j: (0, j)),    # beta1 tile
            pl.BlockSpec((TJ, Dp), lambda j: (j, 0)),   # w2 row tile
            pl.BlockSpec((1, Dp), lambda j: (0, 0)),    # b2 (resident)
            pl.BlockSpec((1, Dp), lambda j: (0, 0)),    # gamma2 (resident)
            pl.BlockSpec((1, Dp), lambda j: (0, 0)),    # beta2 (resident)
            pl.BlockSpec((Dp, Op), lambda j: (0, 0)),   # w3 (resident)
            pl.BlockSpec((1, Op), lambda j: (0, 0)),    # b3 (resident)
        ],
        out_specs=pl.BlockSpec((Bp, Op), lambda j: (0, 0)),
        scratch_shapes=[pltpu.VMEM((Bp, Dp), jnp.float32)],
    )

    out_padded = pl.pallas_call(
        kernel,
        out_shape=jax.ShapeDtypeStruct((Bp, Op), jnp.float32),
        grid_spec=grid_spec,
        compiler_params=pltpu.CompilerParams(
            dimension_semantics=("arbitrary",),   # hidden-dim axis is a reduction
            vmem_limit_bytes=vmem_limit,
        ),
    )(xp, w1p, b1p, g1p, be1p, w2p, b2p, g2p, be2p, w3p, b3p)

    return out_padded[:B, :Dout]


def init_params(key, input_dim, output_dim):
    """Deterministic synthetic parameters. Linear weights stored as [in, out]."""
    ks = jax.random.split(key, 6)
    scale1 = 1.0 / jnp.sqrt(input_dim)
    return {
        # Linear 1
        "w1": jax.random.uniform(ks[0], (input_dim, input_dim), jnp.float32, -scale1, scale1),
        "b1": jax.random.uniform(ks[1], (1, input_dim), jnp.float32, -scale1, scale1),
        # BatchNorm1d 1 (affine)
        "g1": jnp.ones((1, input_dim), jnp.float32),
        "be1": jnp.zeros((1, input_dim), jnp.float32),
        # Linear 2
        "w2": jax.random.uniform(ks[2], (input_dim, input_dim), jnp.float32, -scale1, scale1),
        "b2": jax.random.uniform(ks[3], (1, input_dim), jnp.float32, -scale1, scale1),
        # BatchNorm1d 2 (affine)
        "g2": jnp.ones((1, input_dim), jnp.float32),
        "be2": jnp.zeros((1, input_dim), jnp.float32),
        # Linear 3
        "w3": jax.random.uniform(ks[4], (input_dim, output_dim), jnp.float32, -scale1, scale1),
        "b3": jax.random.uniform(ks[5], (1, output_dim), jnp.float32, -scale1, scale1),
    }


def projection_head_ref(x, p):
    """Pure-JAX reference mirroring the kernel's bf16-in / f32-accumulate numerics."""
    def bf(a):
        return a.astype(jnp.bfloat16).astype(jnp.float32)

    def bn_relu(h, g, b):
        m = jnp.mean(h, axis=0, keepdims=True)
        v = jnp.mean((h - m) ** 2, axis=0, keepdims=True)
        return jnp.maximum((h - m) * jax.lax.rsqrt(v + BN_EPS) * g + b, 0.0)

    h = bn_relu(bf(x) @ bf(p["w1"]) + p["b1"], p["g1"], p["be1"])
    h = bn_relu(bf(h) @ bf(p["w2"]) + p["b2"], p["g2"], p["be2"])
    return bf(h) @ bf(p["w3"]) + p["b3"]


if __name__ == "__main__":
    batch, input_dim, output_dim = 8, 32, 16

    key = jax.random.PRNGKey(0)
    kx, kp = jax.random.split(key)
    x = jax.random.normal(kx, (batch, input_dim), jnp.float32)
    params = init_params(kp, input_dim, output_dim)

    out = projection_head(x, params)
    out = jax.block_until_ready(out)

    ref = projection_head_ref(x, params)
    assert out.shape == (batch, output_dim)
    assert jnp.allclose(out, ref, atol=1e-2, rtol=1e-2), "kernel mismatch vs reference"

    print("KERNEL_OK")
</pallas_src>

<mosaic_0001>
module attributes {stable_mosaic.version = 11 : i64} {
  func.func @projection_head_kernel(%arg0: i32, %arg1: memref<8x128xbf16, #tpu.memory_space<vmem>>, %arg2: memref<128x128xbf16, #tpu.memory_space<vmem>>, %arg3: memref<1x128xf32, #tpu.memory_space<vmem>>, %arg4: memref<1x128xf32, #tpu.memory_space<vmem>>, %arg5: memref<1x128xf32, #tpu.memory_space<vmem>>, %arg6: memref<128x128xbf16, #tpu.memory_space<vmem>>, %arg7: memref<1x128xf32, #tpu.memory_space<vmem>>, %arg8: memref<1x128xf32, #tpu.memory_space<vmem>>, %arg9: memref<1x128xf32, #tpu.memory_space<vmem>>, %arg10: memref<128x128xbf16, #tpu.memory_space<vmem>>, %arg11: memref<1x128xf32, #tpu.memory_space<vmem>>, %arg12: memref<8x128xf32, #tpu.memory_space<vmem>>, %arg13: memref<8x128xf32, #tpu.memory_space<vmem>>) attributes {dimension_semantics = [#tpu.dimension_semantics<arbitrary>], iteration_bounds = array<i64: 1>, scalar_prefetch = 0 : i64, scratch_operands = 1 : i64, tpu.core_type = #tpu.core_type<tc>, window_params = [{pipeline_mode = #tpu.pipeline_mode<synchronous>, transform_indices = @transform_0, window_bounds = array<i64: 8, 128>}, {transform_indices = @transform_1, window_bounds = array<i64: 128, 128>}, {transform_indices = @transform_2, window_bounds = array<i64: 1, 128>}, {transform_indices = @transform_3, window_bounds = array<i64: 1, 128>}, {transform_indices = @transform_4, window_bounds = array<i64: 1, 128>}, {transform_indices = @transform_5, window_bounds = array<i64: 128, 128>}, {pipeline_mode = #tpu.pipeline_mode<synchronous>, transform_indices = @transform_6, window_bounds = array<i64: 1, 128>}, {pipeline_mode = #tpu.pipeline_mode<synchronous>, transform_indices = @transform_7, window_bounds = array<i64: 1, 128>}, {pipeline_mode = #tpu.pipeline_mode<synchronous>, transform_indices = @transform_8, window_bounds = array<i64: 1, 128>}, {pipeline_mode = #tpu.pipeline_mode<synchronous>, transform_indices = @transform_9, window_bounds = array<i64: 128, 128>}, {pipeline_mode = #tpu.pipeline_mode<synchronous>, transform_indices = @transform_10, window_bounds = array<i64: 1, 128>}, {pipeline_mode = #tpu.pipeline_mode<synchronous>, transform_indices = @transform_11, window_bounds = array<i64: 8, 128>}]} {
    %c0 = arith.constant 0 : index
    %c0_0 = arith.constant 0 : index
    %0 = vector.load %arg1[%c0, %c0_0] : memref<8x128xbf16, #tpu.memory_space<vmem>>, vector<8x128xbf16>
    %c0_1 = arith.constant 0 : index
    %c0_2 = arith.constant 0 : index
    %1 = vector.load %arg2[%c0_1, %c0_2] : memref<128x128xbf16, #tpu.memory_space<vmem>>, vector<128x128xbf16>
    %cst = arith.constant dense<0.000000e+00> : vector<8x128xf32>
    %2 = tpu.matmul %0, %1, %cst {dimension_numbers = #tpu.dot_dimension_numbers<[1], [0], [0], [1], [0, 0, 1, 1], [], []>} : vector<8x128xbf16>, vector<128x128xbf16>, vector<8x128xf32> -> vector<8x128xf32>
    %c0_3 = arith.constant 0 : index
    %c0_4 = arith.constant 0 : index
    %3 = vector.load %arg3[%c0_3, %c0_4] : memref<1x128xf32, #tpu.memory_space<vmem>>, vector<1x128xf32>
    %4 = vector.broadcast %3 : vector<1x128xf32> to vector<8x128xf32>
    %5 = arith.addf %2, %4 : vector<8x128xf32>
    %c0_5 = arith.constant 0 : index
    %c0_6 = arith.constant 0 : index
    %6 = vector.load %arg4[%c0_5, %c0_6] : memref<1x128xf32, #tpu.memory_space<vmem>>, vector<1x128xf32>
    %c0_7 = arith.constant 0 : index
    %c0_8 = arith.constant 0 : index
    %7 = vector.load %arg5[%c0_7, %c0_8] : memref<1x128xf32, #tpu.memory_space<vmem>>, vector<1x128xf32>
    %cst_9 = arith.constant dense<0.000000e+00> : vector<128xf32>
    %8 = vector.multi_reduction <add>, %5, %cst_9 [0] : vector<8x128xf32> to vector<128xf32>
    %9 = vector.shape_cast %8 : vector<128xf32> to vector<1x128xf32>
    %cst_10 = arith.constant 1.250000e-01 : f32
    %10 = vector.broadcast %cst_10 : f32 to vector<1x128xf32>
    %11 = arith.mulf %9, %10 : vector<1x128xf32>
    %12 = vector.broadcast %11 : vector<1x128xf32> to vector<8x128xf32>
    %13 = arith.subf %5, %12 : vector<8x128xf32>
    %14 = arith.mulf %13, %13 : vector<8x128xf32>
    %cst_11 = arith.constant dense<0.000000e+00> : vector<128xf32>
    %15 = vector.multi_reduction <add>, %14, %cst_11 [0] : vector<8x128xf32> to vector<128xf32>
    %16 = vector.shape_cast %15 : vector<128xf32> to vector<1x128xf32>
    %cst_12 = arith.constant 1.250000e-01 : f32
    %17 = vector.broadcast %cst_12 : f32 to vector<1x128xf32>
    %18 = arith.mulf %16, %17 : vector<1x128xf32>
    %cst_13 = arith.constant 9.99999974E-6 : f32
    %19 = vector.broadcast %cst_13 : f32 to vector<1x128xf32>
    %20 = arith.addf %18, %19 : vector<1x128xf32>
    %21 = math.rsqrt %20 : vector<1x128xf32>
    %22 = vector.broadcast %21 : vector<1x128xf32> to vector<8x128xf32>
    %23 = arith.mulf %13, %22 : vector<8x128xf32>
    %24 = vector.broadcast %6 : vector<1x128xf32> to vector<8x128xf32>
    %25 = arith.mulf %23, %24 : vector<8x128xf32>
    %26 = vector.broadcast %7 : vector<1x128xf32> to vector<8x128xf32>
    %27 = arith.addf %25, %26 : vector<8x128xf32>
    %cst_14 = arith.constant 0.000000e+00 : f32
    %28 = vector.broadcast %cst_14 : f32 to vector<8x128xf32>
    %29 = arith.maximumf %27, %28 : vector<8x128xf32>
    %c0_i32 = arith.constant 0 : i32
    %30 = arith.cmpi eq, %arg0, %c0_i32 : i32
    %31 = arith.extui %30 : i1 to i32
    %c0_i32_15 = arith.constant 0 : i32
    %32 = arith.cmpi ne, %31, %c0_i32_15 : i32
    scf.if %32 {
      %cst_25 = arith.constant 0.000000e+00 : f32
      %42 = vector.broadcast %cst_25 : f32 to vector<8x128xf32>
      %c0_26 = arith.constant 0 : index
      %c0_27 = arith.constant 0 : index
      %43 = vector.load %arg13[%c0_26, %c0_27] : memref<8x128xf32, #tpu.memory_space<vmem>>, vector<8x128xf32>
      tpu.vector_store %arg13[%c0_26, %c0_27], %42 {strides = array<i32>} : memref<8x128xf32, #tpu.memory_space<vmem>>, vector<8x128xf32>,
    } else {
    }
    %c0_16 = arith.constant 0 : index
    %c0_17 = arith.constant 0 : index
    %33 = vector.load %arg13[%c0_16, %c0_17] : memref<8x128xf32, #tpu.memory_space<vmem>>, vector<8x128xf32>
    %34 = arith.truncf %29 : vector<8x128xf32> to vector<8x128xbf16>
    %c0_18 = arith.constant 0 : index
    %c0_19 = arith.constant 0 : index
    %35 = vector.load %arg6[%c0_18, %c0_19] : memref<128x128xbf16, #tpu.memory_space<vmem>>, vector<128x128xbf16>
    %cst_20 = arith.constant dense<0.000000e+00> : vector<8x128xf32>
    %36 = tpu.matmul %34, %35, %cst_20 {dimension_numbers = #tpu.dot_dimension_numbers<[1], [0], [0], [1], [0, 0, 1, 1], [], []>} : vector<8x128xbf16>, vector<128x128xbf16>, vector<8x128xf32> -> vector<8x128xf32>
    %37 = arith.addf %33, %36 : vector<8x128xf32>
    %c0_21 = arith.constant 0 : index
    %c0_22 = arith.constant 0 : index
    %38 = vector.load %arg13[%c0_21, %c0_22] : memref<8x128xf32, #tpu.memory_space<vmem>>, vector<8x128xf32>
    tpu.vector_store %arg13[%c0_21, %c0_22], %37 {strides = array<i32>} : memref<8x128xf32, #tpu.memory_space<vmem>>, vector<8x128xf32>,
    %c0_i32_23 = arith.constant 0 : i32
    %39 = arith.cmpi eq, %arg0, %c0_i32_23 : i32
    %40 = arith.extui %39 : i1 to i32
    %c0_i32_24 = arith.constant 0 : i32
    %41 = arith.cmpi ne, %40, %c0_i32_24 : i32
    scf.if %41 {
      %c0_25 = arith.constant 0 : index
      %c0_26 = arith.constant 0 : index
      %42 = vector.load %arg13[%c0_25, %c0_26] : memref<8x128xf32, #tpu.memory_space<vmem>>, vector<8x128xf32>
      %c0_27 = arith.constant 0 : index
      %c0_28 = arith.constant 0 : index
      %43 = vector.load %arg7[%c0_27, %c0_28] : memref<1x128xf32, #tpu.memory_space<vmem>>, vector<1x128xf32>
      %44 = vector.broadcast %43 : vector<1x128xf32> to vector<8x128xf32>
      %45 = arith.addf %42, %44 : vector<8x128xf32>
      %c0_29 = arith.constant 0 : index
      %c0_30 = arith.constant 0 : index
      %46 = vector.load %arg8[%c0_29, %c0_30] : memref<1x128xf32, #tpu.memory_space<vmem>>, vector<1x128xf32>
      %c0_31 = arith.constant 0 : index
      %c0_32 = arith.constant 0 : index
      %47 = vector.load %arg9[%c0_31, %c0_32] : memref<1x128xf32, #tpu.memory_space<vmem>>, vector<1x128xf32>
      %cst_33 = arith.constant dense<0.000000e+00> : vector<128xf32>
      %48 = vector.multi_reduction <add>, %45, %cst_33 [0] : vector<8x128xf32> to vector<128xf32>
      %49 = vector.shape_cast %48 : vector<128xf32> to vector<1x128xf32>
      %cst_34 = arith.constant 1.250000e-01 : f32
      %50 = vector.broadcast %cst_34 : f32 to vector<1x128xf32>
      %51 = arith.mulf %49, %50 : vector<1x128xf32>
      %52 = vector.broadcast %51 : vector<1x128xf32> to vector<8x128xf32>
      %53 = arith.subf %45, %52 : vector<8x128xf32>
      %54 = arith.mulf %53, %53 : vector<8x128xf32>
      %cst_35 = arith.constant dense<0.000000e+00> : vector<128xf32>
      %55 = vector.multi_reduction <add>, %54, %cst_35 [0] : vector<8x128xf32> to vector<128xf32>
      %56 = vector.shape_cast %55 : vector<128xf32> to vector<1x128xf32>
      %cst_36 = arith.constant 1.250000e-01 : f32
      %57 = vector.broadcast %cst_36 : f32 to vector<1x128xf32>
      %58 = arith.mulf %56, %57 : vector<1x128xf32>
      %cst_37 = arith.constant 9.99999974E-6 : f32
      %59 = vector.broadcast %cst_37 : f32 to vector<1x128xf32>
      %60 = arith.addf %58, %59 : vector<1x128xf32>
      %61 = math.rsqrt %60 : vector<1x128xf32>
      %62 = vector.broadcast %61 : vector<1x128xf32> to vector<8x128xf32>
      %63 = arith.mulf %53, %62 : vector<8x128xf32>
      %64 = vector.broadcast %46 : vector<1x128xf32> to vector<8x128xf32>
      %65 = arith.mulf %63, %64 : vector<8x128xf32>
      %66 = vector.broadcast %47 : vector<1x128xf32> to vector<8x128xf32>
      %67 = arith.addf %65, %66 : vector<8x128xf32>
      %cst_38 = arith.constant 0.000000e+00 : f32
      %68 = vector.broadcast %cst_38 : f32 to vector<8x128xf32>
      %69 = arith.maximumf %67, %68 : vector<8x128xf32>
      %70 = arith.truncf %69 : vector<8x128xf32> to vector<8x128xbf16>
      %c0_39 = arith.constant 0 : index
      %c0_40 = arith.constant 0 : index
      %71 = vector.load %arg10[%c0_39, %c0_40] : memref<128x128xbf16, #tpu.memory_space<vmem>>, vector<128x128xbf16>
      %cst_41 = arith.constant dense<0.000000e+00> : vector<8x128xf32>
      %72 = tpu.matmul %70, %71, %cst_41 {dimension_numbers = #tpu.dot_dimension_numbers<[1], [0], [0], [1], [0, 0, 1, 1], [], []>} : vector<8x128xbf16>, vector<128x128xbf16>, vector<8x128xf32> -> vector<8x128xf32>
      %c0_42 = arith.constant 0 : index
      %c0_43 = arith.constant 0 : index
      %73 = vector.load %arg11[%c0_42, %c0_43] : memref<1x128xf32, #tpu.memory_space<vmem>>, vector<1x128xf32>
      %74 = vector.broadcast %73 : vector<1x128xf32> to vector<8x128xf32>
      %75 = arith.addf %72, %74 : vector<8x128xf32>
      %c0_44 = arith.constant 0 : index
      %c0_45 = arith.constant 0 : index
      %76 = vector.load %arg12[%c0_44, %c0_45] : memref<8x128xf32, #tpu.memory_space<vmem>>, vector<8x128xf32>
      tpu.vector_store %arg12[%c0_44, %c0_45], %75 {strides = array<i32>} : memref<8x128xf32, #tpu.memory_space<vmem>>, vector<8x128xf32>,
    } else {
    }
    return
  }
  func.func @transform_0(%arg0: i32) -> (i32, i32) {
    %c0_i32 = arith.constant 0 : i32
    %c0_i32_0 = arith.constant 0 : i32
    %c0_i32_1 = arith.constant 0 : i32
    return %c0_i32, %c0_i32_0 : i32, i32
  }
  func.func @transform_1(%arg0: i32) -> (i32, i32) {
    %c0_i32 = arith.constant 0 : i32
    %c0_i32_0 = arith.constant 0 : i32
    return %c0_i32, %arg0 : i32, i32
  }
  func.func @transform_2(%arg0: i32) -> (i32, i32) {
    %c0_i32 = arith.constant 0 : i32
    %c0_i32_0 = arith.constant 0 : i32
    return %c0_i32, %arg0 : i32, i32
  }
  func.func @transform_3(%arg0: i32) -> (i32, i32) {
    %c0_i32 = arith.constant 0 : i32
    %c0_i32_0 = arith.constant 0 : i32
    return %c0_i32, %arg0 : i32, i32
  }
  func.func @transform_4(%arg0: i32) -> (i32, i32) {
    %c0_i32 = arith.constant 0 : i32
    %c0_i32_0 = arith.constant 0 : i32
    return %c0_i32, %arg0 : i32, i32
  }
  func.func @transform_5(%arg0: i32) -> (i32, i32) {
    %c0_i32 = arith.constant 0 : i32
    %c0_i32_0 = arith.constant 0 : i32
    return %arg0, %c0_i32 : i32, i32
  }
  func.func @transform_6(%arg0: i32) -> (i32, i32) {
    %c0_i32 = arith.constant 0 : i32
    %c0_i32_0 = arith.constant 0 : i32
    %c0_i32_1 = arith.constant 0 : i32
    return %c0_i32, %c0_i32_0 : i32, i32
  }
  func.func @transform_7(%arg0: i32) -> (i32, i32) {
    %c0_i32 = arith.constant 0 : i32
    %c0_i32_0 = arith.constant 0 : i32
    %c0_i32_1 = arith.constant 0 : i32
    return %c0_i32, %c0_i32_0 : i32, i32
  }
  func.func @transform_8(%arg0: i32) -> (i32, i32) {
    %c0_i32 = arith.constant 0 : i32
    %c0_i32_0 = arith.constant 0 : i32
    %c0_i32_1 = arith.constant 0 : i32
    return %c0_i32, %c0_i32_0 : i32, i32
  }
  func.func @transform_9(%arg0: i32) -> (i32, i32) {
    %c0_i32 = arith.constant 0 : i32
    %c0_i32_0 = arith.constant 0 : i32
    %c0_i32_1 = arith.constant 0 : i32
    return %c0_i32, %c0_i32_0 : i32, i32
  }
  func.func @transform_10(%arg0: i32) -> (i32, i32) {
    %c0_i32 = arith.constant 0 : i32
    %c0_i32_0 = arith.constant 0 : i32
    %c0_i32_1 = arith.constant 0 : i32
    return %c0_i32, %c0_i32_0 : i32, i32
  }
  func.func @transform_11(%arg0: i32) -> (i32, i32) {
    %c0_i32 = arith.constant 0 : i32
    %c0_i32_0 = arith.constant 0 : i32
    %c0_i32_1 = arith.constant 0 : i32
    return %c0_i32, %c0_i32_0 : i32, i32
  }
}

</mosaic_0001>

<bundles_post_ra>
// kernel: tpu_custom_call.1
= control target key start
LH: loop header
LB: loop body
LE: loop exit
PB: predicated region body
PF: predicated region fallthrough
CT: control target
= control target key end

     0   :  { %16 = vsyncpa [#allocation4], 0  ;;  %s826_s0 = inlined_call_operand.hbm [shape: bf16[8,128], index: 0, kind: input, shape index: {}]   ;;  %s827_s1 = inlined_call_operand.hbm [shape: bf16[128,128], index: 1, kind: input, shape index: {}]   ;;  %s828_s2 = inlined_call_operand.vmem [shape: f32[1,128], index: 2, kind: input, shape index: {}]   ;;  %s829_s3 = inlined_call_operand.vmem [shape: f32[1,128], index: 3, kind: input, shape index: {}]   ;;  %s830_s4 = inlined_call_operand.vmem [shape: f32[1,128], index: 4, kind: input, shape index: {}]   ;;  %s831_s5 = inlined_call_operand.hbm [shape: bf16[128,128], index: 5, kind: input, shape index: {}]   ;;  %s832_s6 = inlined_call_operand.vmem [shape: f32[1,128], index: 6, kind: input, shape index: {}]   ;;  %s833_s7 = inlined_call_operand.vmem [shape: f32[1,128], index: 7, kind: input, shape index: {}]   ;;  %s834_s8 = inlined_call_operand.vmem [shape: f32[1,128], index: 8, kind: input, shape index: {}]   ;;  %s835_s9 = inlined_call_operand.hbm [shape: bf16[128,128], index: 9, kind: input, shape index: {}]   ;;  %s836_s10 = inlined_call_operand.vmem [shape: f32[1,128], index: 10, kind: input, shape index: {}]   ;;  %s837_s11 = inlined_call_operand.hbm [shape: f32[8,128], index: 11, kind: output, shape index: {}]  }
   0x1   :  { %17 = vsyncpa [#allocation7], 0 }
   0x2   :  { %18 = vsyncpa [#allocation10], 0  ;;  %s35_s19 = sshll.u32 %s827_s1, 4  ;;  %s36_s19 = int_to_ptr.hbm [resolvable:$true] %s35_s19 }
   0x3   :  { %19 = vsyncpa [#allocation5], 0  ;;  %s723_s20 = smov [#allocation6]   ;;  %s25_s24 = sshll.u32 %s826_s0, 4  ;;  %s26_s24 = int_to_ptr.hbm [resolvable:$true] %s25_s24 }
   0x4   :  { %s37_s21 = sshll.u32 %s723_s20, 4  ;;  %s724_s25 = smov 64   ;;  %s38_s21 = int_to_ptr.vmem [resolvable:$true] %s37_s21 }
   0x5   :  { %s725_s26 = smov 4   ;;  %s726_s27 = smov [#allocation3]  }
   0x6   :  { %43 = dma.hbm_to_vmem [thread:$0]  %s36_s19, 1024, %s38_s21, [#allocation7], %s724_s25, %s724_s25, %s725_s26  }
   0x7   :  { %s27_s28 = sshll.u32 %s726_s27, 4  ;;  %s54_s12 = sshll.u32 %s831_s5, 4  ;;  %s28_s28 = int_to_ptr.vmem [resolvable:$true] %s27_s28  ;;  %s55_s12 = int_to_ptr.hbm [resolvable:$true] %s54_s12 }
   0x8   :  { %30 = dma.hbm_to_vmem [thread:$0]  %s26_s24, 64, %s28_s28, [#allocation4]  }
   0x9   :  { %s73_s14 = sshll.u32 %s835_s9, 4  ;;  %s727_s15 = smov [#allocation8]   ;;  %s74_s14 = int_to_ptr.hbm [resolvable:$true] %s73_s14 }
   0xa   :  { %s56_s16 = sshll.u32 %s727_s15, 4  ;;  %s728_s0 = smov [#allocation9]   ;;  %s57_s16 = int_to_ptr.vmem [resolvable:$true] %s56_s16 }
   0xb   :  { %62 = dma.hbm_to_vmem [thread:$0]  %s55_s12, 1024, %s57_s16, [#allocation7], %s724_s25, %s724_s25, %s725_s26  }
   0xc   :  { %s75_s17 = sshll.u32 %s728_s0, 4  ;;  %s76_s17 = int_to_ptr.vmem [resolvable:$true] %s75_s17 }
   0xd   :  { %81 = dma.hbm_to_vmem [thread:$0]  %s74_s14, 1024, %s76_s17, [#allocation10], %s724_s25, %s724_s25, %s725_s26  }
   0xe   :  { %715 = dma.done.wait [#allocation4], 64  }
   0xf   :  { %716 = vsyncadd [#allocation4], 4294967232 }
  0x10   :  { %717 = dma.done.wait [#allocation7], 2048  }
  0x11   :  { %718 = vsyncadd [#allocation7], 4294965248 }
  0x12   :  { %719 = dma.done.wait [#allocation10], 1024  }
  0x13   :  { %720 = vsyncadd [#allocation10], 4294966272  ;;  %v560_v0 = vld [vmem:[#allocation6 + $0x38] sm:$0xff]  ;;  %v559_v1 = vld [vmem:[#allocation6 + $0x30] sm:$0xff]  ;;  %s729_s26 = smov [#allocation11]  }
  0x14   :  { %169 = vmatpush.bf16.msra.mxu0 %v560_v0  ;;  %v558_v2 = vld [vmem:[#allocation6 + $0x28] sm:$0xff]  ;;  %v557_v3 = vld [vmem:[#allocation6 + $0x20] sm:$0xff]  ;;  %v556_v4 = vld [vmem:[#allocation6 + $0x18] sm:$0xff]  ;;  %s443_s27 = sshll.u32 %s729_s26, 4  ;;  %s444_s27 = int_to_ptr.vmem [resolvable:$true] %s443_s27 }
  0x15   :  { %v555_v5 = vld [vmem:[#allocation6 + $0x10] sm:$0xff]  ;;  %v554_v6 = vld [vmem:[#allocation6 + $0x8] sm:$0xff]  ;;  %v553_v7 = vld [vmem:[#allocation6] sm:$0xff] }
  0x16   :  { %v100_v8 = vld [vmem:[#allocation3] sm:$0xf]  ;;  %v567_v14 = vld [vmem:[#allocation8 + $0x30] sm:$0xff]  ;;  %v566_v16 = vld [vmem:[#allocation8 + $0x28] sm:$0xff] }
  0x17   :  { %v584_v9 = vld [vmem:[%s828_s2] ss:$0 sm:$0xff]  ;;  %v565_v20 = vld [vmem:[#allocation8 + $0x20] sm:$0xff]  ;;  %v563_v26 = vld [vmem:[#allocation8 + $0x10] sm:$0xff] }
  0x18   :  { %170 = vmatpush.bf16.msra.mxu0 %v559_v1  ;;  %v568_v11 = vld [vmem:[#allocation8 + $0x38] sm:$0xff]  ;;  %v562_v29 = vld [vmem:[#allocation8 + $0x8] sm:$0xff]  ;;  %v561_v32 = vld [vmem:[#allocation8] sm:$0xff] }
  0x19   :  { %292 = vmatpush.bf16.msra.mxu1 %v568_v11  ;;  %v564_v23 = vld [vmem:[#allocation8 + $0x18] sm:$0xff]  ;;  %v575_v57 = vld [vmem:[#allocation9 + $0x30] sm:$0xff]  ;;  %v574_v59 = vld [vmem:[#allocation9 + $0x28] sm:$0xff] }
  0x1a   :  { %v585_v44 = vld [vmem:[%s829_s3] ss:$0 sm:$0xff]  ;;  %v573_v63 = vld [vmem:[#allocation9 + $0x20] sm:$0xff] }
  0x1b   :  { %v586_v47 = vld [vmem:[%s830_s4] ss:$0 sm:$0xff]  ;;  %v569_v11 = vld [vmem:[#allocation9] sm:$0xff] }
  0x1c   :  { %171 = vmatpush.bf16.msra.mxu0 %v558_v2  ;;  %v587_v52 = vld [vmem:[%s832_s6] ss:$0 sm:$0xff] }
  0x1d   :  { %293 = vmatpush.bf16.msra.mxu1 %v567_v14  ;;  %v576_v54 = vld [vmem:[#allocation9 + $0x38] sm:$0xff] }
  0x1e   :  { %424 = vmatpush.bf16.msra.mxu2 %v576_v54  ;;  %v572_v2 = vld [vmem:[#allocation9 + $0x18] sm:$0xff] }
  0x20   :  { %172 = vmatpush.bf16.msra.mxu0 %v557_v3 }
  0x21   :  { %294 = vmatpush.bf16.msra.mxu1 %v566_v16 }
  0x22   :  { %425 = vmatpush.bf16.msra.mxu2 %v575_v57 }
  0x24   :  { %173 = vmatpush.bf16.msra.mxu0 %v556_v4 }
  0x25   :  { %295 = vmatpush.bf16.msra.mxu1 %v565_v20 }
  0x26   :  { %426 = vmatpush.bf16.msra.mxu2 %v574_v59 }
  0x28   :  { %174 = vmatpush.bf16.msra.mxu0 %v555_v5  ;;  %v571_v5 = vld [vmem:[#allocation9 + $0x10] sm:$0xff] }
  0x29   :  { %296 = vmatpush.bf16.msra.mxu1 %v564_v23  ;;  %v588_v23 = vld [vmem:[%s833_s7] ss:$0 sm:$0xff]  ;;  %s445_s7 = sshll.u32 %s837_s11, 4  ;;  %s446_s7 = int_to_ptr.hbm [resolvable:$true] %s445_s7 }
  0x2a   :  { %427 = vmatpush.bf16.msra.mxu2 %v573_v63 }
  0x2c   :  { %175 = vmatpush.bf16.msra.mxu0 %v554_v6 }
  0x2d   :  { %297 = vmatpush.bf16.msra.mxu1 %v563_v26  ;;  %v589_v26 = vld [vmem:[%s834_s8] ss:$0 sm:$0xff] }
  0x2e   :  { %428 = vmatpush.bf16.msra.mxu2 %v572_v2 }
  0x30   :  { %176 = vmatpush.bf16.msra.mxu0 %v553_v7 }
  0x31   :  { %298 = vmatpush.bf16.msra.mxu1 %v562_v29 }
  0x32   :  { %429 = vmatpush.bf16.msra.mxu2 %v571_v5 }
  0x33   :  { %177 = vmatmul.bf16.vlgmr.msra.gmra.mxu0 %v100_v8  ;;  %v570_v8 = vld [vmem:[#allocation9 + $0x8] sm:$0xff] }
  0x35   :  { %299 = vmatpush.bf16.msra.mxu1 %v561_v32 }
  0x36   :  { %430 = vmatpush.bf16.msra.mxu2 %v570_v8 }
  0x3a   :  { %431 = vmatpush.bf16.msra.mxu2 %v569_v11 }
  0xb0   :  { %v178_v10 = vpop.f32.mrf.mxu0 }
  0xb1   :  { %v179_v12 = vadd.f32 %v584_v9, %v178_v10 }
  0xb3   :  { %v184_v13 = vrot.slane %v179_v12, 4 }
  0xb5   :  { %v185_v15 = vadd.f32 %v184_v13, %v179_v12 }
  0xb7   :  { %v186_v17 = vrot.slane %v185_v15, 2 }
  0xb8   :  { %v180_v18 = vpop.f32.mrf.mxu0 }
  0xb9   :  { %v187_v19 = vadd.f32 %v186_v17, %v185_v15 }
  0xbb   :  { %v188_v21 = vrot.slane %v187_v19, 1 }
  0xbd   :  { %v189_v22 = vadd.f32 %v188_v21, %v187_v19 }
  0xbf   :  { %v190_v24 = vmul.f32 0.125, %v189_v22 }
  0xc1   :  { %v191_v25 = vsub.f32 %v179_v12, %v190_v24 }
  0xc3   :  { %v192_v27 = vmul.f32 %v191_v25, %v191_v25 }
  0xc5   :  { %v193_v28 = vrot.slane %v192_v27, 4 }
  0xc7   :  { %v194_v30 = vadd.f32 %v193_v28, %v192_v27 }
  0xc9   :  { %v195_v31 = vrot.slane %v194_v30, 2 }
  0xcb   :  { %v196_v33 = vadd.f32 %v195_v31, %v194_v30  ;;  %v590_v31 = vld [vmem:[%s836_s10] ss:$0 sm:$0xff] }
  0xcd   :  { %v197_v34 = vrot.slane %v196_v33, 1 }
  0xcf   :  { %v198_v35 = vadd.f32 %v197_v34, %v196_v33 }
  0xd1   :  { %v199_v36 = vmul.f32 0.125, %v198_v35 }
  0xd3   :  { %v200_v37 = vadd.f32 1e-05, %v199_v36 }
  0xd5   :  { %591 = vrsqrt.f32 %v200_v37  ;;  %vm207_vm1 = vweird.f32 %v200_v37 }
  0xdb   :  { %v592_v38 = vpop.eup %591 }
  0xdc   :  { %v202_v39 = vmul.f32 %v592_v38, %v200_v37  ;;  %vm208_vm0 = vweird.f32 %v592_v38 }
  0xdd   :  { %vm209_vm2 = vmor %vm207_vm1, %vm208_vm0 }
  0xde   :  { %v203_v40 = vmul.f32 %v592_v38, %v202_v39 }
  0xe0   :  { %v204_v41 = vmul.f32 0.5, %v203_v40 }
  0xe2   :  { %v205_v42 = vsub.f32 1.5, %v204_v41 }
  0xe4   :  { %v206_v43 = vmul.f32 %v592_v38, %v205_v42 }
  0xe6   :  { %v210_v45 = vsel %vm209_vm2, %v592_v38, %v206_v43 }
  0xe7   :  { %v211_v46 = vmul.f32 %v210_v45, %v191_v25 }
  0xe9   :  { %v215_v48 = vmul.f32 %v585_v44, %v211_v46 }
  0xeb   :  { %v219_v49 = vadd.f32 %v586_v47, %v215_v48 }
  0xed   :  { %v220_v50 = vmax.f32 %v219_v49, 0.0 }
  0xef   :  { %v227_v51 = vpack.c.bf16 %v220_v50, %v220_v50 }
  0xf1   :  { %300 = vmatmul.bf16.vlgmr.msra.gmra.mxu1 %v227_v51 }
 0x16e   :  { %v301_v53 = vpop.f32.mrf.mxu1 }
 0x16f   :  { %v315_v55 = vadd.f32 %v587_v52, %v301_v53 }
 0x171   :  { %v318_v56 = vrot.slane %v315_v55, 4 }
 0x173   :  { %v319_v58 = vadd.f32 %v318_v56, %v315_v55 }
 0x175   :  { %v320_v60 = vrot.slane %v319_v58, 2 }
 0x176   :  { %v303_v61 = vpop.f32.mrf.mxu1 }
 0x177   :  { %v321_v62 = vadd.f32 %v320_v60, %v319_v58 }
 0x179   :  { %v322_v0 = vrot.slane %v321_v62, 1 }
 0x17b   :  { %v323_v1 = vadd.f32 %v322_v0, %v321_v62 }
 0x17d   :  { %v324_v3 = vmul.f32 0.125, %v323_v1 }
 0x17f   :  { %v325_v4 = vsub.f32 %v315_v55, %v324_v3 }
 0x181   :  { %v326_v6 = vmul.f32 %v325_v4, %v325_v4 }
 0x183   :  { %v327_v7 = vrot.slane %v326_v6, 4 }
 0x185   :  { %v328_v9 = vadd.f32 %v327_v7, %v326_v6 }
 0x187   :  { %v329_v10 = vrot.slane %v328_v9, 2 }
 0x189   :  { %v330_v12 = vadd.f32 %v329_v10, %v328_v9 }
 0x18b   :  { %v331_v13 = vrot.slane %v330_v12, 1 }
 0x18d   :  { %v332_v14 = vadd.f32 %v331_v13, %v330_v12 }
 0x18f   :  { %v333_v15 = vmul.f32 0.125, %v332_v14 }
 0x191   :  { %v334_v16 = vadd.f32 1e-05, %v333_v15 }
 0x193   :  { %593 = vrsqrt.f32 %v334_v16  ;;  %vm341_vm4 = vweird.f32 %v334_v16 }
 0x199   :  { %v594_v17 = vpop.eup %593 }
 0x19a   :  { %v336_v18 = vmul.f32 %v594_v17, %v334_v16  ;;  %vm342_vm3 = vweird.f32 %v594_v17 }
 0x19b   :  { %vm343_vm5 = vmor %vm341_vm4, %vm342_vm3 }
 0x19c   :  { %v337_v19 = vmul.f32 %v594_v17, %v336_v18 }
 0x19e   :  { %v338_v20 = vmul.f32 0.5, %v337_v19 }
 0x1a0   :  { %v339_v21 = vsub.f32 1.5, %v338_v20 }
 0x1a2   :  { %v340_v22 = vmul.f32 %v594_v17, %v339_v21 }
 0x1a4   :  { %v344_v24 = vsel %vm343_vm5, %v594_v17, %v340_v22 }
 0x1a5   :  { %v345_v25 = vmul.f32 %v344_v24, %v325_v4 }
 0x1a7   :  { %v349_v27 = vmul.f32 %v588_v23, %v345_v25 }
 0x1a9   :  { %v353_v28 = vadd.f32 %v589_v26, %v349_v27 }
 0x1ab   :  { %v354_v29 = vmax.f32 %v353_v28, 0.0 }
 0x1ad   :  { %v355_v30 = vpack.c.bf16 %v354_v29, %v354_v29 }
 0x1af   :  { %432 = vmatmul.bf16.vlgmr.msra.gmra.mxu2 %v355_v30 }
 0x232   :  { %v433_v32 = vpop.f32.mrf.mxu2 }
 0x233   :  { %v434_v33 = vadd.f32 %v590_v31, %v433_v32 }
 0x235   :  { %437 = vst [vmem:[#allocation11] sm:$0xff] %v434_v33 }
 0x236   :  { %448 = dma.vmem_to_hbm [thread:$0]  %s444_s27, 128, %s446_s7, [#allocation5]  }
 0x23a   :  { %v435_v34 = vpop.f32.mrf.mxu2 }
 0x23b   :  { %721 = dma.done.wait [#allocation5], 128  }
 0x23c   :  { %722 = vsyncadd [#allocation5], 4294967168 }
 0x23d   :  { %453 = vsyncpa [#allocation4], 1 }
 0x23e   :  { %454 = vsyncpa [#allocation7], 1 }
 0x23f   :  { %455 = vsyncpa [#allocation10], 1 }
 0x240   :  { %456 = vsyncpa [#allocation5], 1 }

</bundles_post_ra>
